<compile_context>
chip_gen: v6e
topology: v6e:2x2x1
jax: 0.10.0
libtpu: 0.0.40
codegen_flags: <defaults>
</compile_context>

<pallas_src>
import jax
import jax.numpy as jnp
from jax.experimental import pallas as pl
from jax.experimental.pallas import tpu as pltpu


def _se_kernel(x_ref, w1t_ref, b1_ref, w2t_ref, b2_ref, o_ref):
    # x_ref block: (Nb, C, HW).
    # Squeeze: spatial sum accumulated in f32 (1/HW is folded into w1t, so the
    # mean is recovered by the first matmul).
    pooled = jnp.sum(x_ref[...].astype(jnp.float32), axis=-1)        # (Nb, C)

    # Excitation: two 1x1 convs as tiny matmuls, all in f32.
    h = jnp.dot(pooled, w1t_ref[...],
                preferred_element_type=jnp.float32) + b1_ref[...]    # (Nb, Cs)
    h = jnp.maximum(h, 0.0)                                          # ReLU
    s = jnp.dot(h, w2t_ref[...],
                preferred_element_type=jnp.float32) + b2_ref[...]    # (Nb, C)
    s = jax.nn.sigmoid(s)                                            # (Nb, C)

    # Scale: re-read x from the ref (avoids a block-sized f32 temp in VMEM).
    o_ref[...] = (s.astype(x_ref.dtype)[:, :, None] * x_ref[...]).astype(o_ref.dtype)


def _device_vmem_params():
    """Per-generation (soft block-size target, VMEM budget) in bytes."""
    try:
        kind = jax.devices()[0].device_kind.lower()
    except Exception:
        kind = ""
    if "v5" in kind:                 # v5e/v5p: 128 MiB VMEM, ~0.8 TB/s HBM
        return 6 << 20, 64 << 20
    if "v6" in kind:                 # v6e: 128 MiB VMEM, ~1.4 TB/s HBM
        return 12 << 20, 96 << 20
    # v7x (64 MiB VMEM per TensorCore) or unknown: stay conservative.
    return 8 << 20, 48 << 20


def _block_footprint_bytes(nb, c, hw, itemsize):
    """Conservative VMEM footprint of one grid step: double-buffered input and
    output blocks with (sublane, lane) layout padding, a possible f32 cast
    temporary, plus fixed slack for weights / compiler scratch."""
    sub = 8 if itemsize >= 4 else (8 * 4) // itemsize    # 8 rows f32, 16 bf16
    c_pad = -(-c // sub) * sub
    hw_pad = -(-hw // 128) * 128
    blk = nb * c_pad * hw_pad * itemsize
    c_pad32 = -(-c // 8) * 8
    blk_f32 = nb * c_pad32 * hw_pad * 4
    return 4 * blk + blk_f32 + (4 << 20)


def _pick_batch_block(n, bytes_per_image, footprint, target_bytes, vmem_budget):
    """Largest divisor Nb of n whose block meets the soft size target and the
    VMEM budget, preferring >= 4 grid steps (2 per v7x TensorCore) and an even
    step count when n allows.  Returns None if not even Nb=1 fits VMEM."""
    divisors = [d for d in range(1, n + 1) if n % d == 0]
    prefs = ((4, True), (4, False), (2, True), (2, False), (1, False))
    for min_steps, want_even in prefs:
        cands = []
        for nb in divisors:
            steps = n // nb
            if steps < min_steps or (want_even and steps % 2):
                continue
            if nb * bytes_per_image > target_bytes:
                continue
            if footprint(nb) > vmem_budget:
                continue
            cands.append(nb)
        if cands:
            return max(cands)
    return 1 if footprint(1) <= vmem_budget else None


@jax.jit
def squeeze_excitation(x, w1, b1, w2, b2):
    """x: (N, C, H, W). w1: (Cs, C), b1: (Cs,), w2: (C, Cs), b2: (C,).
    Returns same shape/dtype as x (PyTorch SqueezeExcitation forward)."""
    N, C, H, W = x.shape
    Cs = w1.shape[0]
    HW = H * W

    itemsize = jnp.dtype(x.dtype).itemsize
    target_bytes, vmem_budget = _device_vmem_params()
    footprint = lambda nb: _block_footprint_bytes(nb, C, HW, itemsize)
    nb = _pick_batch_block(N, C * HW * itemsize, footprint, target_bytes, vmem_budget)

    if nb is None:
        # A single image's (C, HW) block (double-buffered) exceeds the VMEM
        # budget — extremely unusual for SE shapes.
        # TODO(synk): add a spatially-tiled two-pass (pool-accumulate + scale)
        # Pallas path for pathologically large per-image activations.
        mean = jnp.mean(x.astype(jnp.float32), axis=(2, 3))          # (N, C)
        h = jnp.maximum(mean @ w1.astype(jnp.float32).T
                        + b1.astype(jnp.float32), 0.0)               # (N, Cs)
        s = jax.nn.sigmoid(h @ w2.astype(jnp.float32).T
                           + b2.astype(jnp.float32))                 # (N, C)
        return (s[:, :, None, None].astype(x.dtype) * x).astype(x.dtype)

    # Fold the average pool's 1/HW into layer_1's weight; transpose both so the
    # kernel does (Nb, C) @ (C, Cs) and (Nb, Cs) @ (Cs, C).
    w1t = (w1.astype(jnp.float32) / float(HW)).T                     # (C, Cs)
    w2t = w2.astype(jnp.float32).T                                   # (Cs, C)
    b1_2d = b1.astype(jnp.float32).reshape(1, Cs)
    b2_2d = b2.astype(jnp.float32).reshape(1, C)

    x_flat = x.reshape(N, C, HW)                                     # no pad
    grid = (N // nb,)
    vmem_limit = int(min(vmem_budget, max(footprint(nb), 24 << 20)))

    cost = pl.CostEstimate(
        flops=int(N * (2 * C * HW + 2 * C * Cs + 2 * Cs * C)),
        transcendentals=int(N * C),                                   # sigmoid
        bytes_accessed=int(2 * N * C * HW * itemsize + 4 * (2 * C * Cs + C + Cs)),
    )

    out_flat = pl.pallas_call(
        _se_kernel,
        out_shape=jax.ShapeDtypeStruct((N, C, HW), x.dtype),
        grid_spec=pltpu.PrefetchScalarGridSpec(
            num_scalar_prefetch=0,
            grid=grid,
            in_specs=[
                pl.BlockSpec((nb, C, HW), lambda n: (n, 0, 0)),   # x (full C, HW extents)
                pl.BlockSpec((C, Cs), lambda n: (0, 0)),          # w1.T / HW
                pl.BlockSpec((1, Cs), lambda n: (0, 0)),          # b1
                pl.BlockSpec((Cs, C), lambda n: (0, 0)),          # w2.T
                pl.BlockSpec((1, C), lambda n: (0, 0)),           # b2
            ],
            out_specs=pl.BlockSpec((nb, C, HW), lambda n: (n, 0, 0)),
        ),
        compiler_params=pltpu.CompilerParams(
            dimension_semantics=("parallel",),
            vmem_limit_bytes=vmem_limit,
        ),
        cost_estimate=cost,
    )(x_flat, w1t, b1_2d, w2t, b2_2d)

    return out_flat.reshape(N, C, H, W)


def reference_se(x, w1, b1, w2, b2):
    """Pure-JAX reference mirroring the PyTorch forward (NCHW)."""
    mean = jnp.mean(x, axis=(2, 3), keepdims=True)                   # (N, C, 1, 1)
    h = jnp.einsum("sc,nchw->nshw", w1, mean) + b1[None, :, None, None]
    h = jnp.maximum(h, 0.0)
    s = jnp.einsum("cs,nshw->nchw", w2, h) + b2[None, :, None, None]
    return jax.nn.sigmoid(s) * x


if __name__ == "__main__":
    # Module config: channels=4, ratio=1/16 -> squeezed_channels = max(1, 0) = 1
    N, C, H, W = 2, 4, 16, 16
    Cs = max(1, int(C * (1.0 / 16)))

    key = jax.random.PRNGKey(0)
    kx, k1, k2, k3, k4 = jax.random.split(key, 5)

    x = jax.random.normal(kx, (N, C, H, W), dtype=jnp.float32)
    # Conv2d(k=1) weights are (out, in, 1, 1); kept here as (out, in).
    w1 = jax.random.normal(k1, (Cs, C), dtype=jnp.float32) * 0.5   # layer_1.weight
    b1 = jax.random.normal(k2, (Cs,), dtype=jnp.float32) * 0.1     # layer_1.bias
    w2 = jax.random.normal(k3, (C, Cs), dtype=jnp.float32) * 0.5   # layer_2.weight
    b2 = jax.random.normal(k4, (C,), dtype=jnp.float32) * 0.1      # layer_2.bias

    out = squeeze_excitation(x, w1, b1, w2, b2)
    out = jax.block_until_ready(out)

    ref = reference_se(x, w1, b1, w2, b2)
    assert out.shape == x.shape and out.dtype == x.dtype
    assert jnp.allclose(out, ref, atol=1e-5, rtol=1e-5), "mismatch vs reference"

    print("KERNEL_OK")
</pallas_src>

<mosaic_0001>
module attributes {stable_mosaic.version = 11 : i64} {
  func.func @_se_kernel(%arg0: i32, %arg1: memref<1x4x256xf32, #tpu.memory_space<vmem>>, %arg2: memref<4x1xf32, #tpu.memory_space<vmem>>, %arg3: memref<1x1xf32, #tpu.memory_space<vmem>>, %arg4: memref<1x4xf32, #tpu.memory_space<vmem>>, %arg5: memref<1x4xf32, #tpu.memory_space<vmem>>, %arg6: memref<1x4x256xf32, #tpu.memory_space<vmem>>) attributes {dimension_semantics = [#tpu.dimension_semantics<parallel>], iteration_bounds = array<i64: 2>, scalar_prefetch = 0 : i64, scratch_operands = 0 : i64, tpu.core_type = #tpu.core_type<tc>, window_params = [{transform_indices = @transform_0, window_bounds = array<i64: 1, 4, 256>}, {pipeline_mode = #tpu.pipeline_mode<synchronous>, transform_indices = @transform_1, window_bounds = array<i64: 4, 1>}, {pipeline_mode = #tpu.pipeline_mode<synchronous>, transform_indices = @transform_2, window_bounds = array<i64: 1, 1>}, {pipeline_mode = #tpu.pipeline_mode<synchronous>, transform_indices = @transform_3, window_bounds = array<i64: 1, 4>}, {pipeline_mode = #tpu.pipeline_mode<synchronous>, transform_indices = @transform_4, window_bounds = array<i64: 1, 4>}, {transform_indices = @transform_5, window_bounds = array<i64: 1, 4, 256>}]} {
    %c0 = arith.constant 0 : index
    %c0_0 = arith.constant 0 : index
    %c0_1 = arith.constant 0 : index
    %0 = vector.load %arg1[%c0, %c0_0, %c0_1] : memref<1x4x256xf32, #tpu.memory_space<vmem>>, vector<1x4x256xf32>
    %cst = arith.constant dense<0.000000e+00> : vector<1x4xf32>
    %1 = vector.multi_reduction <add>, %0, %cst [2] : vector<1x4x256xf32> to vector<1x4xf32>
    %c0_2 = arith.constant 0 : index
    %c0_3 = arith.constant 0 : index
    %2 = vector.load %arg2[%c0_2, %c0_3] : memref<4x1xf32, #tpu.memory_space<vmem>>, vector<4x1xf32>
    %cst_4 = arith.constant dense<0.000000e+00> : vector<1x1xf32>
    %3 = tpu.matmul %1, %2, %cst_4 {dimension_numbers = #tpu.dot_dimension_numbers<[1], [0], [0], [1], [0, 0, 1, 1], [], []>} : vector<1x4xf32>, vector<4x1xf32>, vector<1x1xf32> -> vector<1x1xf32>
    %c0_5 = arith.constant 0 : index
    %c0_6 = arith.constant 0 : index
    %4 = vector.load %arg3[%c0_5, %c0_6] : memref<1x1xf32, #tpu.memory_space<vmem>>, vector<1x1xf32>
    %5 = arith.addf %3, %4 : vector<1x1xf32>
    %cst_7 = arith.constant 0.000000e+00 : f32
    %6 = vector.broadcast %cst_7 : f32 to vector<1x1xf32>
    %7 = arith.maximumf %5, %6 : vector<1x1xf32>
    %c0_8 = arith.constant 0 : index
    %c0_9 = arith.constant 0 : index
    %8 = vector.load %arg4[%c0_8, %c0_9] : memref<1x4xf32, #tpu.memory_space<vmem>>, vector<1x4xf32>
    %cst_10 = arith.constant dense<0.000000e+00> : vector<1x4xf32>
    %9 = tpu.matmul %7, %8, %cst_10 {dimension_numbers = #tpu.dot_dimension_numbers<[1], [0], [0], [1], [0, 0, 1, 1], [], []>} : vector<1x1xf32>, vector<1x4xf32>, vector<1x4xf32> -> vector<1x4xf32>
    %c0_11 = arith.constant 0 : index
    %c0_12 = arith.constant 0 : index
    %10 = vector.load %arg5[%c0_11, %c0_12] : memref<1x4xf32, #tpu.memory_space<vmem>>, vector<1x4xf32>
    %11 = arith.addf %9, %10 : vector<1x4xf32>
    %12 = arith.negf %11 : vector<1x4xf32>
    %13 = math.exp %12 : vector<1x4xf32>
    %cst_13 = arith.constant 1.000000e+00 : f32
    %14 = vector.broadcast %cst_13 : f32 to vector<1x4xf32>
    %15 = arith.addf %14, %13 : vector<1x4xf32>
    %16 = arith.divf %14, %15 : vector<1x4xf32>
    %17 = vector.shape_cast %16 : vector<1x4xf32> to vector<1x4x1xf32>
    %c0_14 = arith.constant 0 : index
    %c0_15 = arith.constant 0 : index
    %c0_16 = arith.constant 0 : index
    %18 = vector.load %arg1[%c0_14, %c0_15, %c0_16] : memref<1x4x256xf32, #tpu.memory_space<vmem>>, vector<1x4x256xf32>
    %19 = vector.broadcast %17 : vector<1x4x1xf32> to vector<1x4x256xf32>
    %20 = arith.mulf %19, %18 : vector<1x4x256xf32>
    %c0_17 = arith.constant 0 : index
    %c0_18 = arith.constant 0 : index
    %c0_19 = arith.constant 0 : index
    %21 = vector.load %arg6[%c0_17, %c0_18, %c0_19] : memref<1x4x256xf32, #tpu.memory_space<vmem>>, vector<1x4x256xf32>
    tpu.vector_store %arg6[%c0_17, %c0_18, %c0_19], %20 {strides = array<i32>} : memref<1x4x256xf32, #tpu.memory_space<vmem>>, vector<1x4x256xf32>,
    return
  }
  func.func @transform_0(%arg0: i32) -> (i32, i32, i32) {
    %c0_i32 = arith.constant 0 : i32
    %c0_i32_0 = arith.constant 0 : i32
    %c0_i32_1 = arith.constant 0 : i32
    return %arg0, %c0_i32, %c0_i32_0 : i32, i32, i32
  }
  func.func @transform_1(%arg0: i32) -> (i32, i32) {
    %c0_i32 = arith.constant 0 : i32
    %c0_i32_0 = arith.constant 0 : i32
    %c0_i32_1 = arith.constant 0 : i32
    return %c0_i32, %c0_i32_0 : i32, i32
  }
  func.func @transform_2(%arg0: i32) -> (i32, i32) {
    %c0_i32 = arith.constant 0 : i32
    %c0_i32_0 = arith.constant 0 : i32
    %c0_i32_1 = arith.constant 0 : i32
    return %c0_i32, %c0_i32_0 : i32, i32
  }
  func.func @transform_3(%arg0: i32) -> (i32, i32) {
    %c0_i32 = arith.constant 0 : i32
    %c0_i32_0 = arith.constant 0 : i32
    %c0_i32_1 = arith.constant 0 : i32
    return %c0_i32, %c0_i32_0 : i32, i32
  }
  func.func @transform_4(%arg0: i32) -> (i32, i32) {
    %c0_i32 = arith.constant 0 : i32
    %c0_i32_0 = arith.constant 0 : i32
    %c0_i32_1 = arith.constant 0 : i32
    return %c0_i32, %c0_i32_0 : i32, i32
  }
  func.func @transform_5(%arg0: i32) -> (i32, i32, i32) {
    %c0_i32 = arith.constant 0 : i32
    %c0_i32_0 = arith.constant 0 : i32
    %c0_i32_1 = arith.constant 0 : i32
    return %arg0, %c0_i32, %c0_i32_0 : i32, i32, i32
  }
}

</mosaic_0001>

<bundles_post_ra>
// kernel: squeeze_excitation.1
= control target key start
LH: loop header
LB: loop body
LE: loop exit
PB: predicated region body
PF: predicated region fallthrough
CT: control target
= control target key end

     0   :  { %s568_s20 = smov 0   ;;  %s601_s0 = inlined_call_operand.vmem [shape: f32[2,4,256], index: 0, kind: input, shape index: {}]   ;;  %s602_s1 = inlined_call_operand.vmem [shape: f32[4,1], index: 1, kind: input, shape index: {}]   ;;  %s603_s2 = inlined_call_operand.<no memory space> [shape: f32[1,1], index: 2, kind: input, shape index: {}]   ;;  %s604_s3 = inlined_call_operand.vmem [shape: f32[1,4], index: 3, kind: input, shape index: {}]   ;;  %s605_s4 = inlined_call_operand.vmem [shape: f32[1,4], index: 4, kind: input, shape index: {}]   ;;  %s606_s5 = inlined_call_operand.vmem [shape: f32[2,4,256], index: 5, kind: output, shape index: {}]  }
   0x1   :  { %v10_v0 = vstv %s603_s2 }
   0x2   :  { %11 = vst [vmem:[#allocation2] sm:$0x1] %v10_v0 }
   0x3 LB: > { %s478_s21 = sadd.s32 4294967295, %s531_s20   ;;  %p482_p0 = scmp.ge.s32.totalorder %s531_s20, 1  ;;  %s531_s20 = sphi %s568_s20, %s17_s20  }
   0x4   : > { %p189_p1 = scmp.lt.s32.totalorder %s531_s20, 3 }
   0x6   : > { %p190_p2 = pnand %p482_p0, %p189_p1 }
   0x7   : > { %p217_p3 = scmp.lt.s32.totalorder (!%p190_p2), %s478_s21, 1 }
   0x8   : > { %193 = sbr.rel (%p190_p2) target bundleno = 708 (0x2c4), region = 40 }
   0xd   : > { %s608_s21 = smov (!%p217_p3, %s478_s21), 1  ;;  %vm231_vm0 = vcmask 1043456   ;;  %v533_v6 = vmov 0.0   ;;  %v237_v7 = vld [vmem:[%s602_s1] sm:$0xf]  ;;  %vm534_vm1 = vmmov 0   ;;  %v240_v8 = vlaneseq }
   0xe   : > { %s494_s2 = sshll.u32 %s608_s21, 3  ;;  %500 = vmatprep.subr.mxu0 %v533_v6  ;;  %505 = vmatprep.subr.mxu1 %v533_v6  ;;  %vm246_vm2 = vcmask 31744   ;;  %v323_v14 = vld [vmem:[%s604_s3] sm:$0x1]  ;;  %vm329_vm3 = vcmask 1040384   ;;  %vm325_vm4 = vcmask 7168  }
   0xf   : > { %s221_s24 = scalar_lea.vmem %s601_s0, %s494_s2  ;;  %501 = vmatpush3.msk.msra.mxu0 %vm231_vm0, %v237_v7  ;;  %502 = vmatprep.mubr.msk.f32.mxu0 %vm534_vm1, %v533_v6  ;;  %v241_v9 = vand.u32 127, %v240_v8  ;;  %v243_v10 = vshrl.u32 %v240_v8, 7  ;;  %v238_v15 = vld [vmem:[#allocation2] sm:$0x1]  ;;  %s226_s8 = scalar_lea.vmem %s606_s5, %s494_s2 }
  0x10   : > { %v227_v1 = vld [vmem:[%s221_s24] sm:$0xff]  ;;  %507 = vmatprep.mubr.msk.f32.mxu1 %vm534_vm1, %v533_v6  ;;  %506 = vmatpush3.msk.msra.mxu1 %vm329_vm3, %v323_v14 }
  0x11   : > { %v229_v2 = vcombine.high %v227_v1, %v227_v1  ;;  %v232_v3 = vsel %vm231_vm0, %v227_v1, 0.0  ;;  %v244_v11 = vsub.s32 %v241_v9, %v243_v10  ;;  %v324_v20 = vld [vmem:[%s605_s4] sm:$0x1]  ;;  %v411_v27 = vsub.s32 0, %v243_v10 }
  0x13   : > { %v233_v4 = vsel %vm231_vm0, %v229_v2, 0.0 }
  0x14   : > { %v234_v5 = vadd.f32 %v233_v4, %v232_v3 }
  0x16   : > { %235 = vadd.xlane.f32.xlu0 %v234_v5 }
  0x9f   : > { %v236_v12 = vpop.xlane.xlu0 %235 }
  0xa0   : > { %v245_v13 = vrot.slane %v236_v12, %v244_v11 }
  0xa2   : > { %503 = vmatmul.mubr.msk.f32.vlgmr.msra.gmra.mxu0 %vm246_vm2, %v245_v13 }
 0x162   : > { %v318_v16 = vpop.f32.mrf.mxu0 }
 0x163   : > { %v319_v17 = vadd.f32 %v318_v16, %v238_v15 }
 0x164   : > { %v504_v18 = vpop.f32.mrf.mxu0 }
 0x165   : > { %v322_v19 = vmax.f32 %v319_v17, 0.0 }
 0x167   : > { %508 = vmatmul.mubr.msk.f32.vlgmr.msra.gmra.mxu1 %vm325_vm4, %v322_v19 }
 0x227   : > { %v399_v21 = vpop.f32.mrf.mxu1 }
 0x228   : > { %v400_v22 = vadd.f32 %v399_v21, %v324_v20 }
 0x229   : > { %v509_v23 = vpop.f32.mrf.mxu1 }
 0x22a   : > { %v491_v24 = vmul.f32 -1.442695, %v400_v22 }
 0x22c   : > { %521 = vpow2.f32 %v491_v24 }
 0x239   : > { %v522_v25 = vpop.eup %521 }
 0x23a   : > { %v406_v26 = vadd.f32 1.0, %v522_v25 }
 0x23c   : > { %523 = vrcp.f32 %v406_v26 }
 0x249   : > { %v524_v28 = vpop.eup %523 }
 0x24a   : > { %v412_v29 = vrot.slane %v524_v28, %v411_v27 }
 0x24c   : > { %414 = vbcast.lane.b32.xlu0 %v412_v29, 256 }
 0x2be   : > { %v415_v30 = vpop.permute.xlu0 %414 }
 0x2bf   : > { %v416_v31 = vmul.f32 %v415_v30, %v227_v1  ;;  %v417_v32 = vmul.f32 %v415_v30, %v229_v2 }
 0x2c1   : > { %v420_v33 = vcombine.low %v416_v31, %v417_v32 }
 0x2c3   : > { %422 = vst [vmem:[%s226_s8] sm:$0xff] %v420_v33 }
 0x2c4 PF: > { %s17_s20 = sadd.s32 1, %s531_s20  }
 0x2c5   : > { %p14_p4 = scmp.ge.s32.totalorder %s17_s20, 4  }
 0x2c7   :  { %16 = sbr.rel (!%p14_p4) target bundleno = 3 (0x3), region = 70 }

</bundles_post_ra>
